<compile_context>
chip_gen: v6e
topology: v6e:2x2x1
jax: 0.10.0
libtpu: 0.0.40
codegen_flags: <defaults>
</compile_context>

<pallas_src>
import functools

import jax
import jax.numpy as jnp
from jax.experimental import pallas as pl
from jax.experimental.pallas import tpu as pltpu

_VMEM = pltpu.MemorySpace.VMEM


def _round_up(x, m):
    return (x + m - 1) // m * m


def _graph_constructor_kernel(e_ref, w_ref, b_ref,
                              score_ref, nv1_ref, nv2_ref, *, alpha, dp):
    """Fused wide linear + tanh, then one NT matmul antisymmetric score.

    e_ref     : [Np, Dp]    padded node embeddings (shared by both linears)
    w_ref     : [Dp, 2*Dp]  packed [W1 | W2] (x @ W layout), zero padded
    b_ref     : [1, 2*Dp]   packed [b1 | b2], zero padded
    score_ref : [Np, Np]    alpha * (nv1 @ nv2.T - nv2 @ nv1.T)  (pre relu/tanh)
    nv1_ref   : [Np, Dp]    tanh(alpha * lin1(e))
    nv2_ref   : [Np, Dp]    tanh(alpha * lin2(e))
    """
    # One wide MXU matmul covers both linears (f32 accumulation).
    h = jnp.dot(e_ref[...], w_ref[...],
                preferred_element_type=jnp.float32) + b_ref[...]
    nv = jnp.tanh(alpha * h)                      # [Np, 2*Dp]
    nv1 = nv[:, :dp]
    nv2 = nv[:, dp:]
    # Store nodevecs before the score matmul: shorter f32 live ranges and the
    # writeback can overlap the MXU score stage.
    nv1_ref[...] = nv1
    nv2_ref[...] = nv2
    # M = nv1 @ nv2.T (contract dim 1 of both operands -> no relayout transpose).
    m = jax.lax.dot_general(nv1, nv2, (((1,), (1,)), ((), ())),
                            preferred_element_type=jnp.float32)
    # a is antisymmetric: nv2 @ nv1.T == M.T  ->  one matmul + one XLU transpose.
    score_ref[...] = alpha * (m - m.T)


def pack_params(params):
    """One-time (outside the hot path) fuse + lane-pad of lin1/lin2."""
    d = params['lin1_w'].shape[0]
    dp = _round_up(d, 128)
    wcat = jnp.zeros((dp, 2 * dp), jnp.float32)
    wcat = wcat.at[:d, :d].set(params['lin1_w'].astype(jnp.float32))
    wcat = wcat.at[:d, dp:dp + d].set(params['lin2_w'].astype(jnp.float32))
    bcat = jnp.zeros((1, 2 * dp), jnp.float32)
    bcat = bcat.at[0, :d].set(params['lin1_b'].astype(jnp.float32))
    bcat = bcat.at[0, dp:dp + d].set(params['lin2_b'].astype(jnp.float32))
    return {'emb': params['emb'].astype(jnp.float32), 'wcat': wcat, 'bcat': bcat}


def graph_constructor_forward(packed, idx, *, k, alpha):
    """JAX equivalent of graph_constructor.forward(idx) -> (adj, nv1, nv2)."""
    emb = packed['emb']
    wcat = packed['wcat']
    bcat = packed['bcat']
    n = idx.shape[0]
    d = emb.shape[1]
    dp = wcat.shape[0]
    np_ = _round_up(n, 128)   # lane-dense adj / sublane-dense rows

    # Single gather: emb1 and emb2 are nn.Embedding.from_pretrained of the SAME
    # table in the reference module, so one lookup serves both linears.
    e = jnp.take(emb, idx, axis=0).astype(jnp.float32)
    e_p = jnp.zeros((np_, dp), jnp.float32).at[:n, :d].set(e)

    # VMEM budget: inputs + outputs + intermediates (h, M, M.T), 2x headroom.
    f32b = 4
    vmem_need = f32b * (np_ * dp + dp * 2 * dp + 2 * dp        # inputs
                        + np_ * np_ + 2 * np_ * dp             # outputs
                        + np_ * 2 * dp + 2 * np_ * np_)        # intermediates
    vmem_limit = int(min(max(2 * vmem_need, 8 << 20), 48 << 20))

    kern = functools.partial(_graph_constructor_kernel, alpha=float(alpha), dp=dp)
    # TODO(synk): for nnodes >~1-2K the zero-grid all-in-VMEM form hits the
    # v7x 64MiB / v5e 16MiB scoped ceilings; the score stage would need a
    # (row_tile, col_tile) grid with a "parallel" row axis. Real HAGEN sizes
    # (<=256 nodes after padding) fit comfortably, so keep the single fused call.
    score_p, nv1_p, nv2_p = pl.pallas_call(
        kern,
        out_shape=(
            jax.ShapeDtypeStruct((np_, np_), jnp.float32),
            jax.ShapeDtypeStruct((np_, dp), jnp.float32),
            jax.ShapeDtypeStruct((np_, dp), jnp.float32),
        ),
        in_specs=[pl.BlockSpec(memory_space=_VMEM)] * 3,
        out_specs=(
            pl.BlockSpec(memory_space=_VMEM),
            pl.BlockSpec(memory_space=_VMEM),
            pl.BlockSpec(memory_space=_VMEM),
        ),
        compiler_params=pltpu.CompilerParams(vmem_limit_bytes=vmem_limit),
    )(e_p, wcat, bcat)

    nv1 = nv1_p[:n, :d]
    nv2 = nv2_p[:n, :d]
    score = score_p[:n, :n]          # alpha * a  (raw, pre relu/tanh)

    # TODO(synk): row-wise top-k + scatter mask is data-dependent sorting with
    # no clean Pallas TPU equivalent at these sizes; kept in XLA glue.
    # relu(tanh(alpha*x)) is monotone (alpha>0), so top-k on the raw score
    # selects the same surviving values; apply the transcendentals to only the
    # N*k survivors instead of the full N^2 matrix.
    vals, t1 = jax.lax.top_k(score, k)                 # == adj.topk(k, 1) survivors
    adj_vals = jnp.maximum(jnp.tanh(vals), 0.0)        # relu(tanh(alpha*a)) at survivors
    rows = jnp.arange(n, dtype=jnp.int32)[:, None]
    adj = jnp.zeros((n, n), jnp.float32).at[rows, t1].set(adj_vals)
    return adj, nv1, nv2


# --------------------------------------------------------------------------
# Deterministic parameter init (shapes from graph_constructor.__init__,
# static_feat=None branch: Embedding(dim) + Linear(dim, dim) x 2).
# Linear weights are stored in x @ W layout (i.e. torch weight transposed).
# --------------------------------------------------------------------------
def init_params(key, *, n, d):
    k1, k2, k3, k4, k5 = jax.random.split(key, 5)

    def nrm(kk, shape, scale=0.1):
        return scale * jax.random.normal(kk, shape, jnp.float32)

    return {
        'emb': nrm(k1, (n, d)),          # pretrained node embedding table
        'lin1_w': nrm(k2, (d, d)),
        'lin1_b': nrm(k3, (d,)),
        'lin2_w': nrm(k4, (d, d)),
        'lin2_b': nrm(k5, (d,)),
    }


def _reference(params, idx, *, k, alpha):
    """Pure-JAX reference of the PyTorch forward (highest-precision matmuls)."""
    hp = jax.lax.Precision.HIGHEST
    e = jnp.take(params['emb'], idx, axis=0)
    nv1 = jnp.tanh(alpha * (jnp.dot(e, params['lin1_w'], precision=hp)
                            + params['lin1_b']))
    nv2 = jnp.tanh(alpha * (jnp.dot(e, params['lin2_w'], precision=hp)
                            + params['lin2_b']))
    a = (jnp.dot(nv1, nv2.T, precision=hp) - jnp.dot(nv2, nv1.T, precision=hp))
    adj_raw = jnp.maximum(jnp.tanh(alpha * a), 0.0)
    _, t1 = jax.lax.top_k(adj_raw, k)
    rows = jnp.arange(idx.shape[0], dtype=jnp.int32)[:, None]
    mask = jnp.zeros_like(adj_raw).at[rows, t1].set(1.0)
    return adj_raw * mask, nv1, nv2


if __name__ == "__main__":
    N = 16        # nnodes (idx covers all nodes, as in HAGEN usage)
    D = 32        # node embedding dim
    K_TOP = 4     # subgraph_size k
    ALPHA = 3.0   # tanhalpha

    key = jax.random.PRNGKey(0)
    params = init_params(key, n=N, d=D)
    packed = pack_params(params)
    idx = jnp.arange(N, dtype=jnp.int32)

    fwd = jax.jit(functools.partial(graph_constructor_forward,
                                    k=K_TOP, alpha=ALPHA))
    adj, nv1, nv2 = fwd(packed, idx)
    jax.block_until_ready((adj, nv1, nv2))

    # Shape / structural checks (match reference module semantics).
    assert adj.shape == (N, N), adj.shape
    assert nv1.shape == (N, D) and nv2.shape == (N, D)
    assert bool(jnp.all(jnp.isfinite(adj)))
    assert bool(jnp.all(jnp.isfinite(nv1))) and bool(jnp.all(jnp.isfinite(nv2)))
    assert bool(jnp.all(adj >= 0.0))
    assert bool(jnp.all(jnp.sum(adj > 0.0, axis=1) <= K_TOP))

    # Numerical check against the pure-JAX reference.
    adj_ref, nv1_ref, nv2_ref = _reference(params, idx, k=K_TOP, alpha=ALPHA)
    assert bool(jnp.allclose(nv1, nv1_ref, atol=2e-3, rtol=2e-3))
    assert bool(jnp.allclose(nv2, nv2_ref, atol=2e-3, rtol=2e-3))
    # Sorted-row compare: robust to tie-break index differences among zeros.
    assert bool(jnp.allclose(jnp.sort(adj, axis=1), jnp.sort(adj_ref, axis=1),
                             atol=5e-3, rtol=5e-3))

    print("KERNEL_OK")
</pallas_src>

<mosaic_0001>
module attributes {stable_mosaic.version = 11 : i64} {
  func.func @_graph_constructor_kernel(%arg0: memref<128x128xf32, #tpu.memory_space<vmem>>, %arg1: memref<128x256xf32, #tpu.memory_space<vmem>>, %arg2: memref<1x256xf32, #tpu.memory_space<vmem>>, %arg3: memref<128x128xf32, #tpu.memory_space<vmem>>, %arg4: memref<128x128xf32, #tpu.memory_space<vmem>>, %arg5: memref<128x128xf32, #tpu.memory_space<vmem>>) attributes {dimension_semantics = [], scalar_prefetch = 0 : i64, scratch_operands = 0 : i64, tpu.core_type = #tpu.core_type<tc>} {
    %c0 = arith.constant 0 : index
    %c0_0 = arith.constant 0 : index
    %0 = vector.load %arg0[%c0, %c0_0] : memref<128x128xf32, #tpu.memory_space<vmem>>, vector<128x128xf32>
    %c0_1 = arith.constant 0 : index
    %c0_2 = arith.constant 0 : index
    %1 = vector.load %arg1[%c0_1, %c0_2] : memref<128x256xf32, #tpu.memory_space<vmem>>, vector<128x256xf32>
    %cst = arith.constant dense<0.000000e+00> : vector<128x256xf32>
    %2 = tpu.matmul %0, %1, %cst {dimension_numbers = #tpu.dot_dimension_numbers<[1], [0], [0], [1], [0, 0, 1, 1], [], []>} : vector<128x128xf32>, vector<128x256xf32>, vector<128x256xf32> -> vector<128x256xf32>
    %c0_3 = arith.constant 0 : index
    %c0_4 = arith.constant 0 : index
    %3 = vector.load %arg2[%c0_3, %c0_4] : memref<1x256xf32, #tpu.memory_space<vmem>>, vector<1x256xf32>
    %4 = vector.broadcast %3 : vector<1x256xf32> to vector<128x256xf32>
    %5 = arith.addf %2, %4 : vector<128x256xf32>
    %cst_5 = arith.constant 3.000000e+00 : f32
    %6 = vector.broadcast %cst_5 : f32 to vector<128x256xf32>
    %7 = arith.mulf %6, %5 : vector<128x256xf32>
    %8 = math.tanh %7 : vector<128x256xf32>
    %9 = vector.extract_strided_slice %8 {offsets = [0, 0], sizes = [128, 128], strides = [1, 1]} : vector<128x256xf32> to vector<128x128xf32>
    %10 = vector.extract_strided_slice %8 {offsets = [0, 128], sizes = [128, 128], strides = [1, 1]} : vector<128x256xf32> to vector<128x128xf32>
    %c0_6 = arith.constant 0 : index
    %c0_7 = arith.constant 0 : index
    %11 = vector.load %arg4[%c0_6, %c0_7] : memref<128x128xf32, #tpu.memory_space<vmem>>, vector<128x128xf32>
    tpu.vector_store %arg4[%c0_6, %c0_7], %9 {strides = array<i32>} : memref<128x128xf32, #tpu.memory_space<vmem>>, vector<128x128xf32>,
    %c0_8 = arith.constant 0 : index
    %c0_9 = arith.constant 0 : index
    %12 = vector.load %arg5[%c0_8, %c0_9] : memref<128x128xf32, #tpu.memory_space<vmem>>, vector<128x128xf32>
    tpu.vector_store %arg5[%c0_8, %c0_9], %10 {strides = array<i32>} : memref<128x128xf32, #tpu.memory_space<vmem>>, vector<128x128xf32>,
    %cst_10 = arith.constant dense<0.000000e+00> : vector<128x128xf32>
    %13 = tpu.matmul %9, %10, %cst_10 {dimension_numbers = #tpu.dot_dimension_numbers<[1], [1], [0], [0], [0, 0, 1, 0], [], []>} : vector<128x128xf32>, vector<128x128xf32>, vector<128x128xf32> -> vector<128x128xf32>
    %14 = tpu.transpose %13, [1, 0] : vector<128x128xf32> -> vector<128x128xf32>
    %15 = arith.subf %13, %14 : vector<128x128xf32>
    %cst_11 = arith.constant 3.000000e+00 : f32
    %16 = vector.broadcast %cst_11 : f32 to vector<128x128xf32>
    %17 = arith.mulf %16, %15 : vector<128x128xf32>
    %c0_12 = arith.constant 0 : index
    %c0_13 = arith.constant 0 : index
    %18 = vector.load %arg3[%c0_12, %c0_13] : memref<128x128xf32, #tpu.memory_space<vmem>>, vector<128x128xf32>
    tpu.vector_store %arg3[%c0_12, %c0_13], %17 {strides = array<i32>} : memref<128x128xf32, #tpu.memory_space<vmem>>, vector<128x128xf32>,
    return
  }
}

</mosaic_0001>

<bundles_post_ra>
// kernel: graph_constructor_forward.1
= control target key start
LH: loop header
LB: loop body
LE: loop exit
PB: predicated region body
PF: predicated region fallthrough
CT: control target
= control target key end

     0   :  { %v724_v3 = vmov 0.0   ;;  %v67_v49 = vlaneseq  ;;  %s1195_s1 = inlined_call_operand.vmem [shape: f32[128,256], index: 1, kind: input, shape index: {}]   ;;  %s1196_s0 = inlined_call_operand.vmem [shape: f32[128,128], index: 0, kind: input, shape index: {}]   ;;  %s1197_s2 = inlined_call_operand.vmem [shape: f32[1,256], index: 2, kind: input, shape index: {}]   ;;  %s1198_s4 = inlined_call_operand.vmem [shape: f32[128,128], index: 4, kind: output, shape index: {1}]   ;;  %s1199_s5 = inlined_call_operand.vmem [shape: f32[128,128], index: 5, kind: output, shape index: {2}]   ;;  %s1200_s3 = inlined_call_operand.vmem [shape: f32[128,128], index: 3, kind: output, shape index: {0}]  }
   0x1   :  { %v64_v0 = vld [vmem:[%s1195_s1 + $0xf8] sm:$0xff]  ;;  %v63_v1 = vld [vmem:[%s1195_s1 + $0xf0] sm:$0xff]  ;;  %v62_v2 = vld [vmem:[%s1195_s1 + $0xe8] sm:$0xff]  ;;  %141 = vmatprep.mubr.f32.mxu0 %v724_v3 }
   0x2   :  { %77 = vmatprep.subr.mxu0 %v64_v0  ;;  %v61_v4 = vld [vmem:[%s1195_s1 + $0xe0] sm:$0xff]  ;;  %v60_v5 = vld [vmem:[%s1195_s1 + $0xd8] sm:$0xff]  ;;  %v59_v6 = vld [vmem:[%s1195_s1 + $0xd0] sm:$0xff]  ;;  %v68_v50 = vshrl.u32 %v67_v49, 7 }
   0x3   :  { %78 = vmatpush1.msra.mxu0 %v63_v1  ;;  %v58_v7 = vld [vmem:[%s1195_s1 + $0xc8] sm:$0xff]  ;;  %v57_v8 = vld [vmem:[%s1195_s1 + $0xc0] sm:$0xff]  ;;  %v56_v9 = vld [vmem:[%s1195_s1 + $0xb8] sm:$0xff] }
   0x4   :  { %79 = vmatprep.subr.mxu0 %v62_v2  ;;  %v55_v10 = vld [vmem:[%s1195_s1 + $0xb0] sm:$0xff]  ;;  %v54_v11 = vld [vmem:[%s1195_s1 + $0xa8] sm:$0xff]  ;;  %v53_v12 = vld [vmem:[%s1195_s1 + $0xa0] sm:$0xff]  ;;  %v69_v51 = vsub.s32 0, %v68_v50  ;;  %v73_v53 = vsub.s32 1, %v68_v50 }
   0x5   :  { %80 = vmatpush1.msra.mxu0 %v61_v4  ;;  %v52_v13 = vld [vmem:[%s1195_s1 + $0x98] sm:$0xff]  ;;  %v51_v14 = vld [vmem:[%s1195_s1 + $0x90] sm:$0xff]  ;;  %v50_v15 = vld [vmem:[%s1195_s1 + $0x88] sm:$0xff] }
   0x6   :  { %81 = vmatprep.subr.mxu0 %v60_v5  ;;  %v49_v16 = vld [vmem:[%s1195_s1 + $0x80] sm:$0xff]  ;;  %v48_v17 = vld [vmem:[%s1195_s1 + $0x78] sm:$0xff]  ;;  %v47_v18 = vld [vmem:[%s1195_s1 + $0x70] sm:$0xff] }
   0x7   :  { %82 = vmatpush1.msra.mxu0 %v59_v6  ;;  %v46_v19 = vld [vmem:[%s1195_s1 + $0x68] sm:$0xff]  ;;  %v45_v20 = vld [vmem:[%s1195_s1 + $0x60] sm:$0xff]  ;;  %v44_v21 = vld [vmem:[%s1195_s1 + $0x58] sm:$0xff] }
   0x8   :  { %83 = vmatprep.subr.mxu0 %v58_v7  ;;  %v43_v22 = vld [vmem:[%s1195_s1 + $0x50] sm:$0xff]  ;;  %v42_v23 = vld [vmem:[%s1195_s1 + $0x48] sm:$0xff]  ;;  %v41_v24 = vld [vmem:[%s1195_s1 + $0x40] sm:$0xff] }
   0x9   :  { %84 = vmatpush1.msra.mxu0 %v57_v8  ;;  %v40_v25 = vld [vmem:[%s1195_s1 + $0x38] sm:$0xff]  ;;  %v39_v26 = vld [vmem:[%s1195_s1 + $0x30] sm:$0xff]  ;;  %v38_v27 = vld [vmem:[%s1195_s1 + $0x28] sm:$0xff] }
   0xa   :  { %85 = vmatprep.subr.mxu0 %v56_v9  ;;  %v37_v28 = vld [vmem:[%s1195_s1 + $0x20] sm:$0xff]  ;;  %v36_v29 = vld [vmem:[%s1195_s1 + $0x18] sm:$0xff]  ;;  %v35_v30 = vld [vmem:[%s1195_s1 + $0x10] sm:$0xff] }
   0xb   :  { %86 = vmatpush1.msra.mxu0 %v55_v10  ;;  %v34_v31 = vld [vmem:[%s1195_s1 + $0x8] sm:$0xff]  ;;  %v33_v32 = vld [vmem:[%s1195_s1] sm:$0xff]  ;;  %v19_v35 = vld [vmem:[%s1196_s0 + $0x10] sm:$0xff] }
   0xc   :  { %87 = vmatprep.subr.mxu0 %v54_v11  ;;  %v17_v33 = vld [vmem:[%s1196_s0] sm:$0xff]  ;;  %v18_v34 = vld [vmem:[%s1196_s0 + $0x8] sm:$0xff]  ;;  %v20_v36 = vld [vmem:[%s1196_s0 + $0x18] sm:$0xff] }
   0xd   :  { %88 = vmatpush1.msra.mxu0 %v53_v12  ;;  %v21_v37 = vld [vmem:[%s1196_s0 + $0x20] sm:$0xff]  ;;  %v22_v38 = vld [vmem:[%s1196_s0 + $0x28] sm:$0xff]  ;;  %v23_v39 = vld [vmem:[%s1196_s0 + $0x30] sm:$0xff] }
   0xe   :  { %89 = vmatprep.subr.mxu0 %v52_v13  ;;  %v24_v40 = vld [vmem:[%s1196_s0 + $0x38] sm:$0xff]  ;;  %v25_v41 = vld [vmem:[%s1196_s0 + $0x40] sm:$0xff]  ;;  %v26_v42 = vld [vmem:[%s1196_s0 + $0x48] sm:$0xff] }
   0xf   :  { %90 = vmatpush1.msra.mxu0 %v51_v14  ;;  %v27_v43 = vld [vmem:[%s1196_s0 + $0x50] sm:$0xff]  ;;  %v28_v44 = vld [vmem:[%s1196_s0 + $0x58] sm:$0xff]  ;;  %v29_v45 = vld [vmem:[%s1196_s0 + $0x60] sm:$0xff] }
  0x10   :  { %91 = vmatprep.subr.mxu0 %v50_v15  ;;  %v30_v46 = vld [vmem:[%s1196_s0 + $0x68] sm:$0xff]  ;;  %v31_v47 = vld [vmem:[%s1196_s0 + $0x70] sm:$0xff]  ;;  %v32_v48 = vld [vmem:[%s1196_s0 + $0x78] sm:$0xff] }
  0x11   :  { %92 = vmatpush1.msra.mxu0 %v49_v16  ;;  %v65_v52 = vld [vmem:[%s1197_s2] sm:$0x3] }
  0x12   :  { %93 = vmatprep.subr.mxu0 %v48_v17  ;;  %v918_v54 = vrot.slane %v65_v52, %v69_v51  ;;  %v920_v55 = vrot.slane %v65_v52, %v73_v53 }
  0x13   :  { %94 = vmatpush1.msra.mxu0 %v47_v18 }
  0x14   :  { %95 = vmatprep.subr.mxu0 %v46_v19 }
  0x15   :  { %96 = vmatpush1.msra.mxu0 %v45_v20 }
  0x16   :  { %97 = vmatprep.subr.mxu0 %v44_v21 }
  0x17   :  { %98 = vmatpush1.msra.mxu0 %v43_v22 }
  0x18   :  { %99 = vmatprep.subr.mxu0 %v42_v23 }
  0x19   :  { %100 = vmatpush1.msra.mxu0 %v41_v24 }
  0x1a   :  { %101 = vmatprep.subr.mxu0 %v40_v25 }
  0x1b   :  { %102 = vmatpush1.msra.mxu0 %v39_v26 }
  0x1c   :  { %103 = vmatprep.subr.mxu0 %v38_v27 }
  0x1d   :  { %104 = vmatpush1.msra.mxu0 %v37_v28 }
  0x1e   :  { %105 = vmatprep.subr.mxu0 %v36_v29 }
  0x1f   :  { %106 = vmatpush1.msra.mxu0 %v35_v30 }
  0x20   :  { %107 = vmatprep.subr.mxu0 %v34_v31 }
  0x21   :  { %108 = vmatpush1.msra.mxu0 %v33_v32 }
  0x22   :  { %142 = vmatmul.mubr.f32.vlgmr.msra.gmra.mxu0 %v17_v33 }
  0x23   :  { %147 = vmatprep.mubr.f32.mxu0 %v724_v3 }
  0x26   :  { %148 = vmatmul.mubr.f32.gmra.mxu0 %v18_v34 }
  0x27   :  { %153 = vmatprep.mubr.f32.mxu0 %v724_v3 }
  0x2a   :  { %154 = vmatmul.mubr.f32.gmra.mxu0 %v19_v35 }
  0x2b   :  { %159 = vmatprep.mubr.f32.mxu0 %v724_v3 }
  0x2e   :  { %160 = vmatmul.mubr.f32.gmra.mxu0 %v20_v36 }
  0x2f   :  { %165 = vmatprep.mubr.f32.mxu0 %v724_v3 }
  0x32   :  { %166 = vmatmul.mubr.f32.gmra.mxu0 %v21_v37 }
  0x33   :  { %171 = vmatprep.mubr.f32.mxu0 %v724_v3 }
  0x36   :  { %172 = vmatmul.mubr.f32.gmra.mxu0 %v22_v38 }
  0x37   :  { %177 = vmatprep.mubr.f32.mxu0 %v724_v3 }
  0x3a   :  { %178 = vmatmul.mubr.f32.gmra.mxu0 %v23_v39 }
  0x3b   :  { %183 = vmatprep.mubr.f32.mxu0 %v724_v3 }
  0x3e   :  { %184 = vmatmul.mubr.f32.gmra.mxu0 %v24_v40 }
  0x3f   :  { %189 = vmatprep.mubr.f32.mxu0 %v724_v3 }
  0x42   :  { %190 = vmatmul.mubr.f32.gmra.mxu0 %v25_v41 }
  0x43   :  { %195 = vmatprep.mubr.f32.mxu0 %v724_v3 }
  0x46   :  { %196 = vmatmul.mubr.f32.gmra.mxu0 %v26_v42 }
  0x47   :  { %201 = vmatprep.mubr.f32.mxu0 %v724_v3 }
  0x4a   :  { %202 = vmatmul.mubr.f32.gmra.mxu0 %v27_v43 }
  0x4b   :  { %207 = vmatprep.mubr.f32.mxu0 %v724_v3 }
  0x4e   :  { %208 = vmatmul.mubr.f32.gmra.mxu0 %v28_v44 }
  0x4f   :  { %213 = vmatprep.mubr.f32.mxu0 %v724_v3 }
  0x52   :  { %214 = vmatmul.mubr.f32.gmra.mxu0 %v29_v45 }
  0x53   :  { %219 = vmatprep.mubr.f32.mxu0 %v724_v3 }
  0x56   :  { %220 = vmatmul.mubr.f32.gmra.mxu0 %v30_v46 }
  0x57   :  { %225 = vmatprep.mubr.f32.mxu0 %v724_v3 }
  0x5a   :  { %226 = vmatmul.mubr.f32.gmra.mxu0 %v31_v47 }
  0x5b   :  { %231 = vmatprep.mubr.f32.mxu0 %v724_v3 }
  0x5e   :  { %232 = vmatmul.mubr.f32.gmra.mxu0 %v32_v48 }
  0xe2   :  { %v143_v56 = vpop.f32.mrf.mxu0 }
  0xe3   :  { %v144_v57 = vadd.f32 %v143_v56, %v918_v54 }
  0xe4   :  { %v145_v58 = vpop.f32.mrf.mxu0 }
  0xe5   :  { %v238_v59 = vmul.f32 3.0, %v144_v57  ;;  %v146_v60 = vadd.f32 %v145_v58, %v920_v55 }
  0xe6   :  { %v149_v61 = vpop.f32.mrf.mxu0 }
  0xe7   :  { %660 = vtanh.f32 %v238_v59  ;;  %v239_v62 = vmul.f32 3.0, %v146_v60  ;;  %v150_v63 = vadd.f32 %v149_v61, %v918_v54 }
  0xe8   :  { %v151_v0 = vpop.f32.mrf.mxu0 }
  0xe9   :  { %662 = vtanh.f32 %v239_v62  ;;  %v240_v1 = vmul.f32 3.0, %v150_v63  ;;  %v152_v2 = vadd.f32 %v151_v0, %v920_v55 }
  0xea   :  { %v155_v3 = vpop.f32.mrf.mxu0 }
  0xeb   :  { %664 = vtanh.f32 %v240_v1  ;;  %v241_v4 = vmul.f32 3.0, %v152_v2  ;;  %v156_v5 = vadd.f32 %v155_v3, %v918_v54 }
  0xec   :  { %v157_v6 = vpop.f32.mrf.mxu0 }
  0xed   :  { %666 = vtanh.f32 %v241_v4  ;;  %v242_v7 = vmul.f32 3.0, %v156_v5  ;;  %v158_v8 = vadd.f32 %v157_v6, %v920_v55 }
  0xee   :  { %v161_v9 = vpop.f32.mrf.mxu0 }
  0xef   :  { %668 = vtanh.f32 %v242_v7  ;;  %v243_v10 = vmul.f32 3.0, %v158_v8  ;;  %v162_v11 = vadd.f32 %v161_v9, %v918_v54 }
  0xf0   :  { %v163_v12 = vpop.f32.mrf.mxu0 }
  0xf1   :  { %670 = vtanh.f32 %v243_v10  ;;  %v244_v13 = vmul.f32 3.0, %v162_v11  ;;  %v164_v14 = vadd.f32 %v163_v12, %v920_v55 }
  0xf2   :  { %v167_v15 = vpop.f32.mrf.mxu0 }
  0xf3   :  { %672 = vtanh.f32 %v244_v13  ;;  %v245_v16 = vmul.f32 3.0, %v164_v14  ;;  %v168_v17 = vadd.f32 %v167_v15, %v918_v54 }
  0xf4   :  { %v661_v18 = vpop.eup %660  ;;  %v169_v19 = vpop.f32.mrf.mxu0 }
  0xf5   :  { %302 = vst [vmem:[%s1198_s4] sm:$0xff] %v661_v18  ;;  %674 = vtanh.f32 %v245_v16  ;;  %v246_v20 = vmul.f32 3.0, %v168_v17  ;;  %v170_v21 = vadd.f32 %v169_v19, %v920_v55  ;;  %635 = vmatprep.mubr.f32.mxu1 %v661_v18 }
  0xf6   :  { %v935_v22 = vpop.eup %662  ;;  %v173_v23 = vpop.f32.mrf.mxu0 }
  0xf7   :  { %318 = vst [vmem:[%s1199_s5] sm:$0xff] %v935_v22  ;;  %676 = vtanh.f32 %v246_v20  ;;  %v247_v24 = vmul.f32 3.0, %v170_v21  ;;  %v174_v25 = vadd.f32 %v173_v23, %v918_v54 }
  0xf8   :  { %v942_v26 = vpop.eup %664  ;;  %v175_v27 = vpop.f32.mrf.mxu0 }
  0xf9   :  { %303 = vst [vmem:[%s1198_s4 + $0x8] sm:$0xff] %v942_v26  ;;  %678 = vtanh.f32 %v247_v24  ;;  %v248_v28 = vmul.f32 3.0, %v174_v25  ;;  %v176_v29 = vadd.f32 %v175_v27, %v920_v55 }
  0xfa   :  { %v949_v30 = vpop.eup %666  ;;  %v179_v31 = vpop.f32.mrf.mxu0 }
  0xfb   :  { %319 = vst [vmem:[%s1199_s5 + $0x8] sm:$0xff] %v949_v30  ;;  %680 = vtanh.f32 %v248_v28  ;;  %v249_v32 = vmul.f32 3.0, %v176_v29  ;;  %v180_v33 = vadd.f32 %v179_v31, %v918_v54 }
  0xfc   :  { %v956_v34 = vpop.eup %668  ;;  %v181_v35 = vpop.f32.mrf.mxu0 }
  0xfd   :  { %304 = vst [vmem:[%s1198_s4 + $0x10] sm:$0xff] %v956_v34  ;;  %682 = vtanh.f32 %v249_v32  ;;  %v250_v36 = vmul.f32 3.0, %v180_v33  ;;  %v182_v37 = vadd.f32 %v181_v35, %v920_v55 }
  0xfe   :  { %v963_v38 = vpop.eup %670  ;;  %v185_v39 = vpop.f32.mrf.mxu0 }
  0xff   :  { %320 = vst [vmem:[%s1199_s5 + $0x10] sm:$0xff] %v963_v38  ;;  %684 = vtanh.f32 %v250_v36  ;;  %v251_v40 = vmul.f32 3.0, %v182_v37  ;;  %v186_v41 = vadd.f32 %v185_v39, %v918_v54 }
 0x100   :  { %v970_v42 = vpop.eup %672  ;;  %v187_v43 = vpop.f32.mrf.mxu0 }
 0x101   :  { %305 = vst [vmem:[%s1198_s4 + $0x18] sm:$0xff] %v970_v42  ;;  %686 = vtanh.f32 %v251_v40  ;;  %v252_v44 = vmul.f32 3.0, %v186_v41  ;;  %v188_v45 = vadd.f32 %v187_v43, %v920_v55 }
 0x102   :  { %v977_v46 = vpop.eup %674  ;;  %v191_v47 = vpop.f32.mrf.mxu0 }
 0x103   :  { %321 = vst [vmem:[%s1199_s5 + $0x18] sm:$0xff] %v977_v46  ;;  %688 = vtanh.f32 %v252_v44  ;;  %v253_v48 = vmul.f32 3.0, %v188_v45  ;;  %v192_v49 = vadd.f32 %v191_v47, %v918_v54 }
 0x104   :  { %v984_v50 = vpop.eup %676  ;;  %v193_v51 = vpop.f32.mrf.mxu0 }
 0x105   :  { %306 = vst [vmem:[%s1198_s4 + $0x20] sm:$0xff] %v984_v50  ;;  %690 = vtanh.f32 %v253_v48  ;;  %v254_v52 = vmul.f32 3.0, %v192_v49  ;;  %v194_v53 = vadd.f32 %v193_v51, %v920_v55 }
 0x106   :  { %v991_v56 = vpop.eup %678  ;;  %v197_v57 = vpop.f32.mrf.mxu0 }
 0x107   :  { %322 = vst [vmem:[%s1199_s5 + $0x20] sm:$0xff] %v991_v56  ;;  %692 = vtanh.f32 %v254_v52  ;;  %v255_v58 = vmul.f32 3.0, %v194_v53  ;;  %v198_v59 = vadd.f32 %v197_v57, %v918_v54 }
 0x108   :  { %v998_v60 = vpop.eup %680  ;;  %v199_v61 = vpop.f32.mrf.mxu0 }
 0x109   :  { %307 = vst [vmem:[%s1198_s4 + $0x28] sm:$0xff] %v998_v60  ;;  %694 = vtanh.f32 %v255_v58  ;;  %v256_v62 = vmul.f32 3.0, %v198_v59  ;;  %v200_v63 = vadd.f32 %v199_v61, %v920_v55 }
 0x10a   :  { %v1005_v0 = vpop.eup %682  ;;  %v203_v1 = vpop.f32.mrf.mxu0 }
 0x10b   :  { %323 = vst [vmem:[%s1199_s5 + $0x28] sm:$0xff] %v1005_v0  ;;  %696 = vtanh.f32 %v256_v62  ;;  %v257_v2 = vmul.f32 3.0, %v200_v63  ;;  %v204_v3 = vadd.f32 %v203_v1, %v918_v54 }
 0x10c   :  { %v1012_v4 = vpop.eup %684  ;;  %v205_v5 = vpop.f32.mrf.mxu0 }
 0x10d   :  { %308 = vst [vmem:[%s1198_s4 + $0x30] sm:$0xff] %v1012_v4  ;;  %698 = vtanh.f32 %v257_v2  ;;  %v258_v6 = vmul.f32 3.0, %v204_v3  ;;  %v206_v7 = vadd.f32 %v205_v5, %v920_v55 }
 0x10e   :  { %v1019_v8 = vpop.eup %686  ;;  %v209_v9 = vpop.f32.mrf.mxu0 }
 0x10f   :  { %324 = vst [vmem:[%s1199_s5 + $0x30] sm:$0xff] %v1019_v8  ;;  %700 = vtanh.f32 %v258_v6  ;;  %v259_v10 = vmul.f32 3.0, %v206_v7  ;;  %v210_v11 = vadd.f32 %v209_v9, %v918_v54 }
 0x110   :  { %v1026_v12 = vpop.eup %688  ;;  %v211_v13 = vpop.f32.mrf.mxu0 }
 0x111   :  { %309 = vst [vmem:[%s1198_s4 + $0x38] sm:$0xff] %v1026_v12  ;;  %702 = vtanh.f32 %v259_v10  ;;  %v260_v14 = vmul.f32 3.0, %v210_v11  ;;  %v212_v15 = vadd.f32 %v211_v13, %v920_v55 }
 0x112   :  { %v1033_v16 = vpop.eup %690  ;;  %v215_v17 = vpop.f32.mrf.mxu0 }
 0x113   :  { %325 = vst [vmem:[%s1199_s5 + $0x38] sm:$0xff] %v1033_v16  ;;  %704 = vtanh.f32 %v260_v14  ;;  %v261_v18 = vmul.f32 3.0, %v212_v15  ;;  %v216_v19 = vadd.f32 %v215_v17, %v918_v54 }
 0x114   :  { %v1040_v20 = vpop.eup %692  ;;  %v217_v21 = vpop.f32.mrf.mxu0 }
 0x115   :  { %310 = vst [vmem:[%s1198_s4 + $0x40] sm:$0xff] %v1040_v20  ;;  %706 = vtanh.f32 %v261_v18  ;;  %v262_v23 = vmul.f32 3.0, %v216_v19  ;;  %v218_v24 = vadd.f32 %v217_v21, %v920_v55 }
 0x116   :  { %v1047_v25 = vpop.eup %694  ;;  %v221_v27 = vpop.f32.mrf.mxu0 }
 0x117   :  { %326 = vst [vmem:[%s1199_s5 + $0x40] sm:$0xff] %v1047_v25  ;;  %708 = vtanh.f32 %v262_v23  ;;  %v263_v28 = vmul.f32 3.0, %v218_v24  ;;  %v222_v29 = vadd.f32 %v221_v27, %v918_v54 }
 0x118   :  { %v1054_v31 = vpop.eup %696  ;;  %v223_v32 = vpop.f32.mrf.mxu0 }
 0x119   :  { %311 = vst [vmem:[%s1198_s4 + $0x48] sm:$0xff] %v1054_v31  ;;  %710 = vtanh.f32 %v263_v28  ;;  %v264_v33 = vmul.f32 3.0, %v222_v29  ;;  %v224_v35 = vadd.f32 %v223_v32, %v920_v55 }
 0x11a   :  { %v699_v36 = vpop.eup %698  ;;  %v227_v37 = vpop.f32.mrf.mxu0 }
 0x11b   :  { %327 = vst [vmem:[%s1199_s5 + $0x48] sm:$0xff] %v699_v36  ;;  %712 = vtanh.f32 %v264_v33  ;;  %v265_v39 = vmul.f32 3.0, %v224_v35  ;;  %v228_v40 = vadd.f32 %v227_v37, %v918_v54 }
 0x11c   :  { %v1065_v41 = vpop.eup %700  ;;  %v229_v43 = vpop.f32.mrf.mxu0 }
 0x11d   :  { %312 = vst [vmem:[%s1198_s4 + $0x50] sm:$0xff] %v1065_v41  ;;  %714 = vtanh.f32 %v265_v39  ;;  %v266_v44 = vmul.f32 3.0, %v228_v40  ;;  %v230_v45 = vadd.f32 %v229_v43, %v920_v55 }
 0x11e   :  { %v703_v47 = vpop.eup %702  ;;  %v233_v48 = vpop.f32.mrf.mxu0 }
 0x11f   :  { %328 = vst [vmem:[%s1199_s5 + $0x50] sm:$0xff] %v703_v47  ;;  %716 = vtanh.f32 %v266_v44  ;;  %v267_v49 = vmul.f32 3.0, %v230_v45  ;;  %v234_v51 = vadd.f32 %v233_v48, %v918_v54 }
 0x120   :  { %v1076_v52 = vpop.eup %704  ;;  %v235_v53 = vpop.f32.mrf.mxu0 }
 0x121   :  { %313 = vst [vmem:[%s1198_s4 + $0x58] sm:$0xff] %v1076_v52  ;;  %718 = vtanh.f32 %v267_v49  ;;  %v268_v57 = vmul.f32 3.0, %v234_v51  ;;  %v236_v58 = vadd.f32 %v235_v53, %v920_v55 }
 0x122   :  { %v707_v59 = vpop.eup %706 }
 0x123   :  { %329 = vst [vmem:[%s1199_s5 + $0x58] sm:$0xff] %v707_v59  ;;  %720 = vtanh.f32 %v268_v57  ;;  %v269_v61 = vmul.f32 3.0, %v236_v58 }
 0x124   :  { %v709_v54 = vpop.eup %708 }
 0x125   :  { %314 = vst [vmem:[%s1198_s4 + $0x60] sm:$0xff] %v709_v54  ;;  %722 = vtanh.f32 %v269_v61 }
 0x126   :  { %v711_v62 = vpop.eup %710 }
 0x127   :  { %330 = vst [vmem:[%s1199_s5 + $0x60] sm:$0xff] %v711_v62 }
 0x128   :  { %v713_v63 = vpop.eup %712 }
 0x129   :  { %315 = vst [vmem:[%s1198_s4 + $0x68] sm:$0xff] %v713_v63 }
 0x12a   :  { %v715_v55 = vpop.eup %714 }
 0x12b   :  { %331 = vst [vmem:[%s1199_s5 + $0x68] sm:$0xff] %v715_v55 }
 0x12c   :  { %v717_v1 = vpop.eup %716 }
 0x12d   :  { %316 = vst [vmem:[%s1198_s4 + $0x70] sm:$0xff] %v717_v1 }
 0x12e   :  { %v719_v2 = vpop.eup %718 }
 0x12f   :  { %332 = vst [vmem:[%s1199_s5 + $0x70] sm:$0xff] %v719_v2 }
 0x130   :  { %v721_v3 = vpop.eup %720 }
 0x131   :  { %317 = vst [vmem:[%s1198_s4 + $0x78] sm:$0xff] %v721_v3 }
 0x132   :  { %v723_v5 = vpop.eup %722 }
 0x133   :  { %333 = vst [vmem:[%s1199_s5 + $0x78] sm:$0xff] %v723_v5  ;;  %603 = vmatprep.subr.mxu1 %v723_v5 }
 0x134   :  { %604 = vmatpush3.xpose.msra.mxu1 %v723_v5 }
 0x135   :  { %605 = vmatprep.subr.mxu1 %v719_v2 }
 0x138   :  { %606 = vmatpush3.xpose.msra.mxu1 %v719_v2 }
 0x139   :  { %607 = vmatprep.subr.mxu1 %v715_v55 }
 0x13c   :  { %608 = vmatpush3.xpose.msra.mxu1 %v715_v55 }
 0x13d   :  { %609 = vmatprep.subr.mxu1 %v711_v62 }
 0x140   :  { %610 = vmatpush3.xpose.msra.mxu1 %v711_v62 }
 0x141   :  { %611 = vmatprep.subr.mxu1 %v707_v59 }
 0x144   :  { %612 = vmatpush3.xpose.msra.mxu1 %v707_v59 }
 0x145   :  { %613 = vmatprep.subr.mxu1 %v703_v47 }
 0x148   :  { %614 = vmatpush3.xpose.msra.mxu1 %v703_v47 }
 0x149   :  { %615 = vmatprep.subr.mxu1 %v699_v36 }
 0x14c   :  { %616 = vmatpush3.xpose.msra.mxu1 %v699_v36 }
 0x14d   :  { %617 = vmatprep.subr.mxu1 %v1047_v25 }
 0x150   :  { %618 = vmatpush3.xpose.msra.mxu1 %v1047_v25 }
 0x151   :  { %619 = vmatprep.subr.mxu1 %v1033_v16 }
 0x154   :  { %620 = vmatpush3.xpose.msra.mxu1 %v1033_v16 }
 0x155   :  { %621 = vmatprep.subr.mxu1 %v1019_v8 }
 0x158   :  { %622 = vmatpush3.xpose.msra.mxu1 %v1019_v8 }
 0x159   :  { %623 = vmatprep.subr.mxu1 %v1005_v0 }
 0x15c   :  { %624 = vmatpush3.xpose.msra.mxu1 %v1005_v0 }
 0x15d   :  { %625 = vmatprep.subr.mxu1 %v991_v56 }
 0x160   :  { %626 = vmatpush3.xpose.msra.mxu1 %v991_v56 }
 0x161   :  { %627 = vmatprep.subr.mxu1 %v977_v46 }
 0x164   :  { %628 = vmatpush3.xpose.msra.mxu1 %v977_v46 }
 0x165   :  { %629 = vmatprep.subr.mxu1 %v963_v38 }
 0x168   :  { %630 = vmatpush3.xpose.msra.mxu1 %v963_v38 }
 0x169   :  { %631 = vmatprep.subr.mxu1 %v949_v30 }
 0x16c   :  { %632 = vmatpush3.xpose.msra.mxu1 %v949_v30 }
 0x16d   :  { %633 = vmatprep.subr.mxu1 %v935_v22 }
 0x170   :  { %634 = vmatpush3.xpose.msra.mxu1 %v935_v22 }
 0x173   :  { %636 = vmatmul.mubr.f32.vlgmr.msra.gmra.mxu1 %v942_v26 }
 0x174   :  { %638 = vmatprep.mubr.f32.mxu1 %v956_v34 }
 0x177   :  { %639 = vmatmul.mubr.f32.gmra.mxu1 %v970_v42 }
 0x178   :  { %641 = vmatprep.mubr.f32.mxu1 %v984_v50 }
 0x17b   :  { %642 = vmatmul.mubr.f32.gmra.mxu1 %v998_v60 }
 0x17c   :  { %644 = vmatprep.mubr.f32.mxu1 %v1012_v4 }
 0x17f   :  { %645 = vmatmul.mubr.f32.gmra.mxu1 %v1026_v12 }
 0x180   :  { %647 = vmatprep.mubr.f32.mxu1 %v1040_v20 }
 0x183   :  { %648 = vmatmul.mubr.f32.gmra.mxu1 %v1054_v31 }
 0x184   :  { %650 = vmatprep.mubr.f32.mxu1 %v1065_v41 }
 0x187   :  { %651 = vmatmul.mubr.f32.gmra.mxu1 %v1076_v52 }
 0x188   :  { %653 = vmatprep.mubr.f32.mxu1 %v709_v54 }
 0x18b   :  { %654 = vmatmul.mubr.f32.gmra.mxu1 %v713_v63 }
 0x18c   :  { %656 = vmatprep.mubr.f32.mxu1 %v717_v1 }
 0x18f   :  { %657 = vmatmul.mubr.f32.gmra.mxu1 %v721_v3 }
 0x233   :  { %v637_v22 = vpop.f32.mrf.mxu1 }
 0x235   :  { %v400_v26 = vpop.f32.mrf.mxu1 }
 0x236   :  { %479 = vxpose.xlu0.b32.start [1/16] %v400_v26, 128 }
 0x237   :  { %v640_v30 = vpop.f32.mrf.mxu1 }
 0x239   :  { %v410_v34 = vpop.f32.mrf.mxu1 }
 0x23a   :  { %480 = vxpose.xlu0.b32.cont [2/16] %v637_v22, 128 }
 0x23b   :  { %v643_v38 = vpop.f32.mrf.mxu1 }
 0x23d   :  { %v420_v42 = vpop.f32.mrf.mxu1 }
 0x23e   :  { %481 = vxpose.xlu0.b32.cont [3/16] %v410_v34, 128 }
 0x23f   :  { %v646_v46 = vpop.f32.mrf.mxu1 }
 0x241   :  { %v430_v50 = vpop.f32.mrf.mxu1 }
 0x242   :  { %482 = vxpose.xlu0.b32.cont [4/16] %v640_v30, 128 }
 0x243   :  { %v649_v56 = vpop.f32.mrf.mxu1 }
 0x245   :  { %v440_v60 = vpop.f32.mrf.mxu1 }
 0x246   :  { %483 = vxpose.xlu0.b32.cont [5/16] %v420_v42, 128 }
 0x247   :  { %v652_v0 = vpop.f32.mrf.mxu1 }
 0x249   :  { %v450_v4 = vpop.f32.mrf.mxu1 }
 0x24a   :  { %484 = vxpose.xlu0.b32.cont [6/16] %v643_v38, 128 }
 0x24b   :  { %v1139_v6 = vpop.f32.mrf.mxu1 }
 0x24d   :  { %v460_v7 = vpop.f32.mrf.mxu1 }
 0x24e   :  { %485 = vxpose.xlu0.b32.cont [7/16] %v430_v50, 128 }
 0x24f   :  { %v1141_v8 = vpop.f32.mrf.mxu1 }
 0x251   :  { %v470_v9 = vpop.f32.mrf.mxu1 }
 0x252   :  { %486 = vxpose.xlu0.b32.cont [8/16] %v646_v46, 128 }
 0x256   :  { %487 = vxpose.xlu0.b32.cont [9/16] %v440_v60, 128 }
 0x25a   :  { %488 = vxpose.xlu0.b32.cont [10/16] %v649_v56, 128 }
 0x25e   :  { %489 = vxpose.xlu0.b32.cont [11/16] %v450_v4, 128 }
 0x262   :  { %490 = vxpose.xlu0.b32.cont [12/16] %v652_v0, 128 }
 0x266   :  { %491 = vxpose.xlu0.b32.cont [13/16] %v460_v7, 128 }
 0x26a   :  { %492 = vxpose.xlu0.b32.cont [14/16] %v1139_v6, 128 }
 0x26e   :  { %493 = vxpose.xlu0.b32.cont [15/16] %v470_v9, 128 }
 0x272   :  { %494 = vxpose.xlu0.b32.end [16/16] %v1141_v8, 128 }
 0x2b2   :  { %v495_v10 = vpop.trf.xlu0 }
 0x2b3   :  { %v511_v11 = vsub.f32 %v400_v26, %v495_v10 }
 0x2b5   :  { %v527_v12 = vmul.f32 3.0, %v511_v11 }
 0x2b6   :  { %v496_v13 = vpop.trf.xlu0 }
 0x2b7   :  { %543 = vst [vmem:[%s1200_s3] sm:$0xff] %v527_v12  ;;  %v512_v14 = vsub.f32 %v637_v22, %v496_v13 }
 0x2b9   :  { %v528_v15 = vmul.f32 3.0, %v512_v14 }
 0x2ba   :  { %v497_v16 = vpop.trf.xlu0 }
 0x2bb   :  { %544 = vst [vmem:[%s1200_s3 + $0x8] sm:$0xff] %v528_v15  ;;  %v513_v17 = vsub.f32 %v410_v34, %v497_v16 }
 0x2bd   :  { %v529_v18 = vmul.f32 3.0, %v513_v17 }
 0x2be   :  { %v498_v19 = vpop.trf.xlu0 }
 0x2bf   :  { %545 = vst [vmem:[%s1200_s3 + $0x10] sm:$0xff] %v529_v18  ;;  %v514_v20 = vsub.f32 %v640_v30, %v498_v19 }
 0x2c1   :  { %v530_v21 = vmul.f32 3.0, %v514_v20 }
 0x2c2   :  { %v499_v23 = vpop.trf.xlu0 }
 0x2c3   :  { %546 = vst [vmem:[%s1200_s3 + $0x18] sm:$0xff] %v530_v21  ;;  %v515_v24 = vsub.f32 %v420_v42, %v499_v23 }
 0x2c5   :  { %v531_v25 = vmul.f32 3.0, %v515_v24 }
 0x2c6   :  { %v500_v27 = vpop.trf.xlu0 }
 0x2c7   :  { %547 = vst [vmem:[%s1200_s3 + $0x20] sm:$0xff] %v531_v25  ;;  %v516_v28 = vsub.f32 %v643_v38, %v500_v27 }
 0x2c9   :  { %v532_v29 = vmul.f32 3.0, %v516_v28 }
 0x2ca   :  { %v501_v31 = vpop.trf.xlu0 }
 0x2cb   :  { %548 = vst [vmem:[%s1200_s3 + $0x28] sm:$0xff] %v532_v29  ;;  %v517_v32 = vsub.f32 %v430_v50, %v501_v31 }
 0x2cd   :  { %v533_v33 = vmul.f32 3.0, %v517_v32 }
 0x2ce   :  { %v502_v35 = vpop.trf.xlu0 }
 0x2cf   :  { %549 = vst [vmem:[%s1200_s3 + $0x30] sm:$0xff] %v533_v33  ;;  %v518_v36 = vsub.f32 %v646_v46, %v502_v35 }
 0x2d1   :  { %v534_v37 = vmul.f32 3.0, %v518_v36 }
 0x2d2   :  { %v503_v39 = vpop.trf.xlu0 }
 0x2d3   :  { %550 = vst [vmem:[%s1200_s3 + $0x38] sm:$0xff] %v534_v37  ;;  %v519_v40 = vsub.f32 %v440_v60, %v503_v39 }
 0x2d5   :  { %v535_v41 = vmul.f32 3.0, %v519_v40 }
 0x2d6   :  { %v504_v43 = vpop.trf.xlu0 }
 0x2d7   :  { %551 = vst [vmem:[%s1200_s3 + $0x40] sm:$0xff] %v535_v41  ;;  %v520_v44 = vsub.f32 %v649_v56, %v504_v43 }
 0x2d9   :  { %v536_v45 = vmul.f32 3.0, %v520_v44 }
 0x2da   :  { %v505_v47 = vpop.trf.xlu0 }
 0x2db   :  { %552 = vst [vmem:[%s1200_s3 + $0x48] sm:$0xff] %v536_v45  ;;  %v521_v48 = vsub.f32 %v450_v4, %v505_v47 }
 0x2dd   :  { %v537_v49 = vmul.f32 3.0, %v521_v48 }
 0x2de   :  { %v506_v51 = vpop.trf.xlu0 }
 0x2df   :  { %553 = vst [vmem:[%s1200_s3 + $0x50] sm:$0xff] %v537_v49  ;;  %v522_v52 = vsub.f32 %v652_v0, %v506_v51 }
 0x2e1   :  { %v538_v53 = vmul.f32 3.0, %v522_v52 }
 0x2e2   :  { %v507_v57 = vpop.trf.xlu0 }
 0x2e3   :  { %554 = vst [vmem:[%s1200_s3 + $0x58] sm:$0xff] %v538_v53  ;;  %v523_v58 = vsub.f32 %v460_v7, %v507_v57 }
 0x2e5   :  { %v539_v59 = vmul.f32 3.0, %v523_v58 }
 0x2e6   :  { %v508_v61 = vpop.trf.xlu0 }
 0x2e7   :  { %555 = vst [vmem:[%s1200_s3 + $0x60] sm:$0xff] %v539_v59  ;;  %v524_v54 = vsub.f32 %v1139_v6, %v508_v61 }
 0x2e9   :  { %v540_v62 = vmul.f32 3.0, %v524_v54 }
 0x2ea   :  { %v509_v63 = vpop.trf.xlu0 }
 0x2eb   :  { %556 = vst [vmem:[%s1200_s3 + $0x68] sm:$0xff] %v540_v62  ;;  %v525_v55 = vsub.f32 %v470_v9, %v509_v63 }
 0x2ed   :  { %v541_v1 = vmul.f32 3.0, %v525_v55 }
 0x2ee   :  { %v510_v2 = vpop.trf.xlu0 }
 0x2ef   :  { %557 = vst [vmem:[%s1200_s3 + $0x70] sm:$0xff] %v541_v1  ;;  %v526_v3 = vsub.f32 %v1141_v8, %v510_v2 }
 0x2f1   :  { %v542_v5 = vmul.f32 3.0, %v526_v3 }
 0x2f3   :  { %558 = vst [vmem:[%s1200_s3 + $0x78] sm:$0xff] %v542_v5 }

</bundles_post_ra>
